<compile_context>
chip_gen: v7x
topology: tpu7x:2x2x1
jax: 0.10.0
libtpu: 0.0.40
codegen_flags: <defaults>
</compile_context>

<pallas_src>
import functools

import jax
import jax.numpy as jnp
from jax.experimental import pallas as pl
from jax.experimental.pallas import tpu as pltpu

F32 = jnp.float32
BF16 = jnp.bfloat16

# ---- shapes consistent with the module --------------------------------------
MEM_DIM = 128        # mem_dim    (lane-aligned)
HIDDEN_DIM = 128     # hidden_dim (lane-aligned)
FEATURE_DIM = 16     # feature_dim
NUM_CLASSES = 2      # wp output is hard-coded to 2 in the reference module
OUT_PAD = 128        # lane-dense padded output width (cols 2..127 are zero)
ROW_BLOCK = 128      # batch rows per grid step on the gridded path


def _vmem_spec():
    return pl.BlockSpec(memory_space=pltpu.MemorySpace.VMEM)


# ============================ Pallas kernel ==================================

def _similarity_kernel(domain_feature,
                       lvec_ref, rvec_ref, feat_ref,
                       wh_ref, bh_ref, wp_ref, bp_ref,
                       out_ref):
    """Fused Similarity.forward.

    wh_ref rows follow the torch concat order:
      [0:M) l*r | [M:2M) |l-r| | [2M:3M) l | [3M:4M) r | [4M:4M+F) feature
    so  entail @ Wh  ==  one K=4M contraction + one tiny K=F contraction.
    """
    m = MEM_DIM
    l = lvec_ref[...]                         # (B, M) f32
    r = rvec_ref[...]                         # (B, M) f32

    # Elementwise distance features in f32 on the VPU (no bf16 VPU on v5e).
    mult_dist = l * r
    abs_dist = jnp.abs(l - r)

    # Lane-axis concat of four exactly-one-vreg-wide pieces (layout free),
    # cast to bf16 and contract in a single K=512 MXU pass (f32 accumulation).
    entail = jnp.concatenate([mult_dist, abs_dist, l, r], axis=1).astype(BF16)
    pre = jnp.dot(entail, wh_ref[0:4 * m, :], preferred_element_type=F32)

    if domain_feature:
        # (1, F) @ (F, H) -> (1, H); broadcast-adds to every batch row.
        pre = pre + jnp.dot(feat_ref[...].astype(BF16),
                            wh_ref[4 * m:4 * m + FEATURE_DIM, :],
                            preferred_element_type=F32)

    pre = pre + bh_ref[...]                   # f32 bias
    hidden = jax.nn.sigmoid(pre)              # f32 (EUP)

    # Lane-dense (B, 128) store; wp/bp are zero-padded past NUM_CLASSES.
    out_ref[...] = (jnp.dot(hidden.astype(BF16), wp_ref[...],
                            preferred_element_type=F32)
                    + bp_ref[...])


# ============================ pallas_call wrapper ============================

def build_similarity(domain_feature):
    kernel = functools.partial(_similarity_kernel, domain_feature)

    def call(lvec, rvec, feature_vec, wh, bh, wp, bp):
        batch = lvec.shape[0]
        feat = feature_vec.reshape(1, FEATURE_DIM).astype(F32)   # no broadcast
        out_shape = jax.ShapeDtypeStruct((batch, OUT_PAD), F32)

        if batch % ROW_BLOCK == 0 and batch >= ROW_BLOCK:
            # Batched path: 1-D parallel grid over row blocks; weights use a
            # constant index_map so they stay VMEM-resident across steps.
            grid = (batch // ROW_BLOCK,)
            in_specs = [
                pl.BlockSpec((ROW_BLOCK, MEM_DIM), lambda i: (i, 0)),   # lvec
                pl.BlockSpec((ROW_BLOCK, MEM_DIM), lambda i: (i, 0)),   # rvec
                pl.BlockSpec((1, FEATURE_DIM),     lambda i: (0, 0)),   # feat
                pl.BlockSpec(wh.shape,             lambda i: (0, 0)),   # wh
                pl.BlockSpec(bh.shape,             lambda i: (0, 0)),   # bh
                pl.BlockSpec(wp.shape,             lambda i: (0, 0)),   # wp
                pl.BlockSpec(bp.shape,             lambda i: (0, 0)),   # bp
            ]
            out_specs = pl.BlockSpec((ROW_BLOCK, OUT_PAD), lambda i: (i, 0))
            padded = pl.pallas_call(
                kernel,
                out_shape=out_shape,
                grid=grid,
                in_specs=in_specs,
                out_specs=out_specs,
                compiler_params=pltpu.CompilerParams(
                    dimension_semantics=("parallel",)),
            )(lvec, rvec, feat, wh, bh, wp, bp)
        else:
            # Small / odd batches: everything whole-array resident, no grid.
            padded = pl.pallas_call(
                kernel,
                out_shape=out_shape,
                in_specs=[_vmem_spec() for _ in range(7)],
                out_specs=_vmem_spec(),
            )(lvec, rvec, feat, wh, bh, wp, bp)

        return padded[:, :NUM_CLASSES]

    return jax.jit(call)


# ============================ parameters =====================================

def init_params(key, domain_feature):
    in_dim = 4 * MEM_DIM + (FEATURE_DIM if domain_feature else 0)
    k1, k2, k3, k4 = jax.random.split(key, 4)
    # Linear weights stored pre-transposed ([in, out]); wh/wp in bf16.
    wh = (jax.random.normal(k1, (in_dim, HIDDEN_DIM), F32) * 0.05).astype(BF16)
    bh = jax.random.normal(k2, (1, HIDDEN_DIM), F32) * 0.05
    wp_small = jax.random.normal(k3, (HIDDEN_DIM, NUM_CLASSES), F32) * 0.05
    bp_small = jax.random.normal(k4, (1, NUM_CLASSES), F32) * 0.05
    # Zero-pad wp/bp to 128 output lanes for a lane-dense kernel store.
    wp = (jnp.zeros((HIDDEN_DIM, OUT_PAD), F32)
          .at[:, :NUM_CLASSES].set(wp_small).astype(BF16))
    bp = jnp.zeros((1, OUT_PAD), F32).at[:, :NUM_CLASSES].set(bp_small)
    return {'wh': wh, 'bh': bh, 'wp': wp, 'bp': bp}


# ============================ pure-JAX reference =============================

def similarity_ref(lvec, rvec, feature_vec, params, domain_feature):
    m = MEM_DIM
    hp = jax.lax.Precision.HIGHEST
    wh = params['wh'].astype(F32)
    wp = params['wp'].astype(F32)

    mult_dist = lvec * rvec
    abs_dist = jnp.abs(lvec - rvec)
    entail = jnp.concatenate([mult_dist, abs_dist, lvec, rvec], axis=1)
    entail = entail.astype(BF16).astype(F32)          # match kernel rounding
    pre = jnp.dot(entail, wh[:4 * m], precision=hp)
    if domain_feature:
        feat = feature_vec.reshape(1, FEATURE_DIM).astype(BF16).astype(F32)
        pre = pre + jnp.dot(feat, wh[4 * m:4 * m + FEATURE_DIM], precision=hp)
    hidden = jax.nn.sigmoid(pre + params['bh'])
    out = jnp.dot(hidden.astype(BF16).astype(F32), wp, precision=hp) + params['bp']
    return out[:, :NUM_CLASSES]


# ============================ main ===========================================

if __name__ == "__main__":
    DOMAIN_FEATURE = True
    BATCH = 256      # many tree-node (lvec, rvec) pairs batched into one call

    key = jax.random.PRNGKey(0)
    k_params, k_l, k_r, k_f = jax.random.split(key, 4)

    params = init_params(k_params, DOMAIN_FEATURE)
    lvec = jax.random.normal(k_l, (BATCH, MEM_DIM), F32)
    rvec = jax.random.normal(k_r, (BATCH, MEM_DIM), F32)
    feature_vec = jax.random.normal(k_f, (FEATURE_DIM,), F32)

    similarity = build_similarity(DOMAIN_FEATURE)
    out = jax.block_until_ready(
        similarity(lvec, rvec, feature_vec,
                   params['wh'], params['bh'], params['wp'], params['bp']))

    ref = jax.block_until_ready(
        similarity_ref(lvec, rvec, feature_vec, params, DOMAIN_FEATURE))

    assert out.shape == (BATCH, NUM_CLASSES)
    assert bool(jnp.all(jnp.isfinite(out)))
    max_err = float(jnp.max(jnp.abs(out - ref)))
    assert bool(jnp.allclose(out, ref, atol=5e-3, rtol=5e-3)), (
        f"max abs err {max_err}")
    print("KERNEL_OK")
</pallas_src>

<mosaic_0001>
module attributes {stable_mosaic.version = 11 : i64} {
  func.func @_similarity_kernel(%arg0: i32, %arg1: memref<128x128xf32, #tpu.memory_space<vmem>>, %arg2: memref<128x128xf32, #tpu.memory_space<vmem>>, %arg3: memref<1x16xf32, #tpu.memory_space<vmem>>, %arg4: memref<528x128xbf16, #tpu.memory_space<vmem>>, %arg5: memref<1x128xf32, #tpu.memory_space<vmem>>, %arg6: memref<128x128xbf16, #tpu.memory_space<vmem>>, %arg7: memref<1x128xf32, #tpu.memory_space<vmem>>, %arg8: memref<128x128xf32, #tpu.memory_space<vmem>>) attributes {dimension_semantics = [#tpu.dimension_semantics<parallel>], iteration_bounds = array<i64: 2>, scalar_prefetch = 0 : i64, scratch_operands = 0 : i64, tpu.core_type = #tpu.core_type<tc>, window_params = [{transform_indices = @transform_0, window_bounds = array<i64: 128, 128>}, {transform_indices = @transform_1, window_bounds = array<i64: 128, 128>}, {pipeline_mode = #tpu.pipeline_mode<synchronous>, transform_indices = @transform_2, window_bounds = array<i64: 1, 16>}, {pipeline_mode = #tpu.pipeline_mode<synchronous>, transform_indices = @transform_3, window_bounds = array<i64: 528, 128>}, {pipeline_mode = #tpu.pipeline_mode<synchronous>, transform_indices = @transform_4, window_bounds = array<i64: 1, 128>}, {pipeline_mode = #tpu.pipeline_mode<synchronous>, transform_indices = @transform_5, window_bounds = array<i64: 128, 128>}, {pipeline_mode = #tpu.pipeline_mode<synchronous>, transform_indices = @transform_6, window_bounds = array<i64: 1, 128>}, {transform_indices = @transform_7, window_bounds = array<i64: 128, 128>}]} {
    %c0 = arith.constant 0 : index
    %c0_0 = arith.constant 0 : index
    %0 = vector.load %arg1[%c0, %c0_0] : memref<128x128xf32, #tpu.memory_space<vmem>>, vector<128x128xf32>
    %c0_1 = arith.constant 0 : index
    %c0_2 = arith.constant 0 : index
    %1 = vector.load %arg2[%c0_1, %c0_2] : memref<128x128xf32, #tpu.memory_space<vmem>>, vector<128x128xf32>
    %2 = arith.mulf %0, %1 : vector<128x128xf32>
    %3 = arith.subf %0, %1 : vector<128x128xf32>
    %4 = math.absf %3 : vector<128x128xf32>
    %5 = tpu.concatenate %2, %4, %0, %1 in 1 : vector<128x128xf32>, vector<128x128xf32>, vector<128x128xf32>, vector<128x128xf32> -> vector<128x512xf32>
    %6 = arith.truncf %5 : vector<128x512xf32> to vector<128x512xbf16>
    %c0_3 = arith.constant 0 : index
    %c0_4 = arith.constant 0 : index
    %7 = vector.load %arg4[%c0_3, %c0_4] : memref<528x128xbf16, #tpu.memory_space<vmem>>, vector<512x128xbf16>
    %cst = arith.constant dense<0.000000e+00> : vector<128x128xf32>
    %8 = tpu.matmul %6, %7, %cst {dimension_numbers = #tpu.dot_dimension_numbers<[1], [0], [0], [1], [0, 0, 1, 1], [], []>} : vector<128x512xbf16>, vector<512x128xbf16>, vector<128x128xf32> -> vector<128x128xf32>
    %c0_5 = arith.constant 0 : index
    %c0_6 = arith.constant 0 : index
    %9 = vector.load %arg3[%c0_5, %c0_6] : memref<1x16xf32, #tpu.memory_space<vmem>>, vector<1x16xf32>
    %10 = arith.truncf %9 : vector<1x16xf32> to vector<1x16xbf16>
    %c512 = arith.constant 512 : index
    %c0_7 = arith.constant 0 : index
    %11 = vector.load %arg4[%c512, %c0_7] : memref<528x128xbf16, #tpu.memory_space<vmem>>, vector<16x128xbf16>
    %cst_8 = arith.constant dense<0.000000e+00> : vector<1x128xf32>
    %12 = tpu.matmul %10, %11, %cst_8 {dimension_numbers = #tpu.dot_dimension_numbers<[1], [0], [0], [1], [0, 0, 1, 1], [], []>} : vector<1x16xbf16>, vector<16x128xbf16>, vector<1x128xf32> -> vector<1x128xf32>
    %13 = vector.broadcast %12 : vector<1x128xf32> to vector<128x128xf32>
    %14 = arith.addf %8, %13 : vector<128x128xf32>
    %c0_9 = arith.constant 0 : index
    %c0_10 = arith.constant 0 : index
    %15 = vector.load %arg5[%c0_9, %c0_10] : memref<1x128xf32, #tpu.memory_space<vmem>>, vector<1x128xf32>
    %16 = vector.broadcast %15 : vector<1x128xf32> to vector<128x128xf32>
    %17 = arith.addf %14, %16 : vector<128x128xf32>
    %18 = arith.negf %17 : vector<128x128xf32>
    %19 = math.exp %18 : vector<128x128xf32>
    %cst_11 = arith.constant 1.000000e+00 : f32
    %20 = vector.broadcast %cst_11 : f32 to vector<128x128xf32>
    %21 = arith.addf %20, %19 : vector<128x128xf32>
    %22 = arith.divf %20, %21 : vector<128x128xf32>
    %23 = arith.truncf %22 : vector<128x128xf32> to vector<128x128xbf16>
    %c0_12 = arith.constant 0 : index
    %c0_13 = arith.constant 0 : index
    %24 = vector.load %arg6[%c0_12, %c0_13] : memref<128x128xbf16, #tpu.memory_space<vmem>>, vector<128x128xbf16>
    %cst_14 = arith.constant dense<0.000000e+00> : vector<128x128xf32>
    %25 = tpu.matmul %23, %24, %cst_14 {dimension_numbers = #tpu.dot_dimension_numbers<[1], [0], [0], [1], [0, 0, 1, 1], [], []>} : vector<128x128xbf16>, vector<128x128xbf16>, vector<128x128xf32> -> vector<128x128xf32>
    %c0_15 = arith.constant 0 : index
    %c0_16 = arith.constant 0 : index
    %26 = vector.load %arg7[%c0_15, %c0_16] : memref<1x128xf32, #tpu.memory_space<vmem>>, vector<1x128xf32>
    %27 = vector.broadcast %26 : vector<1x128xf32> to vector<128x128xf32>
    %28 = arith.addf %25, %27 : vector<128x128xf32>
    %c0_17 = arith.constant 0 : index
    %c0_18 = arith.constant 0 : index
    %29 = vector.load %arg8[%c0_17, %c0_18] : memref<128x128xf32, #tpu.memory_space<vmem>>, vector<128x128xf32>
    tpu.vector_store %arg8[%c0_17, %c0_18], %28 {strides = array<i32>} : memref<128x128xf32, #tpu.memory_space<vmem>>, vector<128x128xf32>,
    return
  }
  func.func @transform_0(%arg0: i32) -> (i32, i32) {
    %c0_i32 = arith.constant 0 : i32
    %c0_i32_0 = arith.constant 0 : i32
    return %arg0, %c0_i32 : i32, i32
  }
  func.func @transform_1(%arg0: i32) -> (i32, i32) {
    %c0_i32 = arith.constant 0 : i32
    %c0_i32_0 = arith.constant 0 : i32
    return %arg0, %c0_i32 : i32, i32
  }
  func.func @transform_2(%arg0: i32) -> (i32, i32) {
    %c0_i32 = arith.constant 0 : i32
    %c0_i32_0 = arith.constant 0 : i32
    %c0_i32_1 = arith.constant 0 : i32
    return %c0_i32, %c0_i32_0 : i32, i32
  }
  func.func @transform_3(%arg0: i32) -> (i32, i32) {
    %c0_i32 = arith.constant 0 : i32
    %c0_i32_0 = arith.constant 0 : i32
    %c0_i32_1 = arith.constant 0 : i32
    return %c0_i32, %c0_i32_0 : i32, i32
  }
  func.func @transform_4(%arg0: i32) -> (i32, i32) {
    %c0_i32 = arith.constant 0 : i32
    %c0_i32_0 = arith.constant 0 : i32
    %c0_i32_1 = arith.constant 0 : i32
    return %c0_i32, %c0_i32_0 : i32, i32
  }
  func.func @transform_5(%arg0: i32) -> (i32, i32) {
    %c0_i32 = arith.constant 0 : i32
    %c0_i32_0 = arith.constant 0 : i32
    %c0_i32_1 = arith.constant 0 : i32
    return %c0_i32, %c0_i32_0 : i32, i32
  }
  func.func @transform_6(%arg0: i32) -> (i32, i32) {
    %c0_i32 = arith.constant 0 : i32
    %c0_i32_0 = arith.constant 0 : i32
    %c0_i32_1 = arith.constant 0 : i32
    return %c0_i32, %c0_i32_0 : i32, i32
  }
  func.func @transform_7(%arg0: i32) -> (i32, i32) {
    %c0_i32 = arith.constant 0 : i32
    %c0_i32_0 = arith.constant 0 : i32
    return %arg0, %c0_i32 : i32, i32
  }
}

</mosaic_0001>

<bundles_post_ra>
// kernel: call.1
= control target key start
LH: loop header
LB: loop body
LE: loop exit
PB: predicated region body
PF: predicated region fallthrough
CT: control target
= control target key end

     0   :  { %s2415_s0 = inlined_call_operand.hbm [shape: f32[256,128], index: 0, kind: input, shape index: {}]   ;;  %s2416_s1 = inlined_call_operand.hbm [shape: f32[256,128], index: 1, kind: input, shape index: {}]   ;;  %s2417_s2 = inlined_call_operand.vmem [shape: f32[1,16], index: 2, kind: input, shape index: {}]   ;;  %s2418_s3 = inlined_call_operand.hbm [shape: bf16[528,128], index: 3, kind: input, shape index: {}]   ;;  %s2419_s4 = inlined_call_operand.vmem [shape: f32[1,128], index: 4, kind: input, shape index: {}]   ;;  %s2420_s5 = inlined_call_operand.hbm [shape: bf16[128,128], index: 5, kind: input, shape index: {}]   ;;  %s2421_s6 = inlined_call_operand.vmem [shape: f32[1,128], index: 6, kind: input, shape index: {}]   ;;  %s2422_s7 = inlined_call_operand.vmem [shape: f32[256,128], index: 7, kind: output, shape index: {}]  }
   0x1   :  { %2426 = sst [smem:[#allocation13_spill]] %s2415_s0 }
   0x2   :  { %12 = vsyncpa [#allocation3], 0 }
   0x3   :  { %14 = vsyncpa [#allocation3 + $0x1], 0 }
   0x4   :  { %15 = vsyncpa [#allocation5], 0 }
   0x5   :  { %17 = vsyncpa [#allocation5 + $0x1], 0 }
   0x6   :  { %18 = vsyncpa [#allocation8], 0  ;;  %s2085_s24 = smov 0   ;;  %s2087_s25 = smov 0  }
   0x7   :  { %s2089_s26 = smov 0   ;;  %s2091_s27 = smov 0  }
   0x8 LB: > { %s2104_s28 = sadd.s32 4294967295, %s2033_s27   ;;  %p44_p0 = scmp.ne.s32.totalorder %s2025_s25, %s2021_s24  ;;  %s2033_s27 = sphi %s2091_s27, %s2441_s27   ;;  %s2029_s26 = sphi %s2089_s26, %s2440_s26   ;;  %s2025_s25 = sphi %s2087_s25, %s2439_s25   ;;  %s2021_s24 = sphi %s2085_s24, %s2438_s24  }
   0x9   : > { %p2423_p1 = scmp.eq.s32.totalorder %s2104_s28, 0  ;;  %p1414_p2 = scmp.ge.s32.totalorder %s2033_s27, 1 }
   0xa   : > { %p212_p3 = scmp.lt.s32.totalorder %s2033_s27, 3  ;;  %s2035_s8 = smov [#allocation6]  }
   0xb   : > { %p2112_p4 = por %p2423_p1, %p44_p0  ;;  %s227_s9 = sshll.u32 %s2035_s8, 4  ;;  %s228_s9 = int_to_ptr.vmem [resolvable:$true] %s227_s9 }
   0xc   : > { %p2116_p5 = pnand %p1414_p2, %p212_p3  ;;  %s2036_s11 = smov [#allocation7]  }
   0xd   : > { %s2427_s29 = scalar_select %p2112_p4, 1, 0 }
   0xe   : > { %s2428_s30 = scalar_select %p2116_p5, 1, 0 }
   0xf   : > { %p1707_p6 = pneg %p2116_p5  ;;  %s243_s12 = sshll.u32 %s2036_s11, 4  ;;  %s2128_s12 = int_to_ptr.vmem [resolvable:$true] %s243_s12 }
  0x10   : > { %s1871_s15 = scalar_lea.hbm %s2418_s3, 4224 }
  0x11   : > { %p2124_p7 = pnand %p1707_p6, %p2423_p1  ;;  %p1872_p8 = scmp.ne.s32.totalorder %s2418_s3, %s1871_s15 }
  0x12   : > { %p1878_p12 = scmp.lt.u32.totalorder %s1871_s15, %s2418_s3 }
  0x13   : > { %p1873_p9 = pneg %p2124_p7 }
  0x15   : > { %p1874_p10 = pnand %p1873_p9, %p1872_p8 }
  0x17   : > { %p1875_p11 = pneg %p1874_p10 }
  0x19   : > { %p1880_p13 = pnand %p1878_p12, %p1875_p11 }
  0x1b   : > { %1883 = shalt.err (!%p1880_p13)
}
  0x1c   : > { %s1884_s20 = scalar_lea.vmem %s228_s9, 4224  ;;  %p1892_p6 = scmp.lt.s32.totalorder %s228_s9, %s228_s9 }
  0x1d   : > { %p1885_p0 = scmp.ne.s32.totalorder %s228_s9, %s1884_s20  ;;  %p1893_p1 = scmp.lt.s32.totalorder %s1884_s20, %s1884_s20 }
  0x1f   : > { %p1887_p2 = pnand %p1885_p0, %p1873_p9  ;;  %p1894_p4 = por %p1893_p1, %p1892_p6 }
  0x21   : > { %p1888_p3 = pneg %p1887_p2 }
  0x23   : > { %p1895_p5 = pnand %p1894_p4, %p1888_p3 }
  0x25   : > { %1898 = shalt.err (!%p1895_p5)
}
  0x26   : > { %s2037_s21 = smov 64   ;;  %s2038_s22 = smov 4  }
  0x27   : > { %1710 = dma.hbm_to_vmem [thread:$0]  (!%p2124_p7), %s2418_s3, 4224, %s228_s9, [#allocation5], %s2037_s21, %s2037_s21, %s2038_s22  }
  0x28   : > { %s1899_s13 = scalar_lea.hbm %s2420_s5, 1024 }
  0x29   : > { %p1900_p8 = scmp.ne.s32.totalorder %s2420_s5, %s1899_s13  ;;  %p1906_p5 = scmp.lt.u32.totalorder %s1899_s13, %s2420_s5 }
  0x2b   : > { %p1902_p1 = pnand %p1900_p8, %p1873_p9 }
  0x2d   : > { %p1903_p4 = pneg %p1902_p1 }
  0x2f   : > { %p1908_p10 = pnand %p1906_p5, %p1903_p4 }
  0x31   : > { %1911 = shalt.err (!%p1908_p10)
}
  0x32   : > { %s1912_s9 = scalar_lea.vmem %s2128_s12, 1024  ;;  %p1920_p0 = scmp.lt.s32.totalorder %s2128_s12, %s2128_s12 }
  0x33   : > { %p1913_p11 = scmp.ne.s32.totalorder %s2128_s12, %s1912_s9  ;;  %p1921_p2 = scmp.lt.s32.totalorder %s1912_s9, %s1912_s9 }
  0x35   : > { %p1915_p12 = pnand %p1913_p11, %p1873_p9  ;;  %p1922_p3 = por %p1921_p2, %p1920_p0 }
  0x37   : > { %p1916_p13 = pneg %p1915_p12 }
  0x39   : > { %p1923_p6 = pnand %p1922_p3, %p1916_p13 }
  0x3b   : > { %1926 = shalt.err (!%p1923_p6)
}
  0x3c   : > { %1713 = dma.hbm_to_vmem [thread:$0]  (!%p2124_p7), %s2420_s5, 1024, %s2128_s12, [#allocation8], %s2037_s21, %s2037_s21, %s2038_s22  }
  0x3d   : > { %s2178_s20 = sadd.s32 1, %s2033_s27   ;;  %s31_s10 = sadd.s32 1, %s2029_s26 }
  0x3e   : > { %s28_s23 = ssub.s32 %s2033_s27, %s2178_s20  ;;  %p38_p9 = scmp.ne.s32.totalorder %s2029_s26, %s2025_s25 }
  0x3f   : > { %p29_p8 = scmp.eq.s32.totalorder %s28_s23, 0  ;;  %p39_p1 = scmp.eq.s32.totalorder %s2033_s27, 0 }
  0x40   : > { %p1723_p4 = scmp.lt.s32.totalorder %s2033_s27, 2  ;;  %s260_s24 = sand.u32 1, %s2029_s26  }
  0x41   : > { %s2189_s8 = scalar_select %p29_p8, %s2029_s26, %s31_s10  }
  0x42   : > { %p40_p5 = por %p39_p1, %p38_p9  ;;  %s2191_s11 = sshll.u32 %s260_s24, 7 }
  0x43   : > { %s1493_s13 = sshll.u32 %s2033_s27, 11  ;;  %s2430_s0 = sld [smem:[#allocation13_spill]] }
  0x44   : > { %s264_s22 = scalar_lea.vmem [#allocation2], %s2191_s11  ;;  %p2202_p7 = pnand %p1723_p4, %p40_p5 }
  0x45   : > { %s271_s15 = sshll.u32 %s264_s22, 4  ;;  %s2208_s17 = scalar_lea.sflag [#allocation3], %s260_s24  ;;  %s2206_s15 = int_to_ptr.vmem [resolvable:$true] %s271_s15 }
  0x46   : > { %p1929_p11 = pneg %p2202_p7 }
  0x49   : > { %s2199_s21 = scalar_lea.hbm %s2430_s0, %s1493_s13  ;;  %s1932_s10 = scalar_lea.hbm %s2430_s0, 4096 }
  0x4a   : > { %s1927_s9 = scalar_lea.hbm %s2199_s21, 2048  ;;  %p1933_p0 = scmp.lt.u32.totalorder %s2199_s21, %s2430_s0 }
  0x4b   : > { %p1928_p10 = scmp.ne.s32.totalorder %s2199_s21, %s1927_s9  ;;  %p1934_p2 = scmp.lt.u32.totalorder %s1932_s10, %s1927_s9 }
  0x4c   : > { %p1936_p6 = scmp.lt.u32.totalorder %s1927_s9, %s2199_s21 }
  0x4d   : > { %p1930_p12 = pnand %p1929_p11, %p1928_p10  ;;  %p1935_p3 = por %p1934_p2, %p1933_p0 }
  0x4f   : > { %p1931_p13 = pneg %p1930_p12  ;;  %p1937_p9 = por %p1936_p6, %p1935_p3 }
  0x51   : > { %p1938_p8 = pnand %p1937_p9, %p1931_p13 }
  0x53   : > { %1941 = shalt.err (!%p1938_p8)
}
  0x54   : > { %s1942_s24 = scalar_lea.vmem %s2206_s15, 2048  ;;  %s2039_s12 = smov [#allocation2]  }
  0x55   : > { %p1943_p1 = scmp.ne.s32.totalorder %s2206_s15, %s1942_s24  ;;  %s1947_s22 = sshll.u32 %s2039_s12, 4  ;;  %s1948_s22 = int_to_ptr.vmem [resolvable:$false] %s1947_s22 }
  0x56   : > { %s1949_s18 = scalar_lea.vmem %s1948_s22, 4096  ;;  %p1950_p10 = scmp.lt.s32.totalorder %s2206_s15, %s1948_s22 }
  0x57   : > { %p1945_p4 = pnand %p1943_p1, %p1929_p11  ;;  %p1951_p12 = scmp.lt.s32.totalorder %s1949_s18, %s1942_s24 }
  0x59   : > { %p1946_p5 = pneg %p1945_p4  ;;  %p1952_p0 = por %p1951_p12, %p1950_p10 }
  0x5b   : > { %p1953_p2 = pnand %p1952_p0, %p1946_p5 }
  0x5d   : > { %1956 = shalt.err (!%p1953_p2)
}
  0x5e   : > { %s2040_s9 = smov 128   ;;  %s2041_s19 = smov 8  }
  0x5f   : > { %1717 = dma.hbm_to_vmem [thread:$0]  (!%p2202_p7), %s2199_s21, 2048, %s2206_s15, %s2208_s17, %s2040_s9, %s2040_s9, %s2041_s19  }
  0x60   : > { %s2244_s14 = scalar_lea.hbm %s2416_s1, %s1493_s13  ;;  %s285_s24 = scalar_lea.vmem [#allocation4], %s2191_s11 }
  0x61   : > { %s292_s12 = sshll.u32 %s285_s24, 4  ;;  %s281_s22 = sand.u32 1, %s2033_s27   ;;  %s2248_s12 = int_to_ptr.vmem [resolvable:$true] %s292_s12 }
  0x62   : > { %s2250_s18 = scalar_lea.sflag [#allocation5], %s281_s22  ;;  %s1957_s0 = scalar_lea.hbm %s2244_s14, 2048 }
  0x63   : > { %p1958_p13 = scmp.ne.s32.totalorder %s2244_s14, %s1957_s0  ;;  %s1962_s15 = scalar_lea.hbm %s2416_s1, 4096 }
  0x64   : > { %p1963_p9 = scmp.lt.u32.totalorder %s2244_s14, %s2416_s1  ;;  %p1964_p8 = scmp.lt.u32.totalorder %s1962_s15, %s1957_s0 }
  0x65   : > { %p1960_p3 = pnand %p1958_p13, %p1929_p11  ;;  %p1966_p4 = scmp.lt.u32.totalorder %s1957_s0, %s2244_s14 }
  0x66   : > { %p1965_p1 = por %p1964_p8, %p1963_p9 }
  0x67   : > { %p1961_p6 = pneg %p1960_p3 }
  0x68   : > { %p1967_p5 = por %p1966_p4, %p1965_p1 }
  0x6a   : > { %p1968_p10 = pnand %p1967_p5, %p1961_p6 }
  0x6c   : > { %1971 = shalt.err (!%p1968_p10)
}
  0x6d   : > { %s1972_s27 = scalar_lea.vmem %s2248_s12, 2048  ;;  %s2042_s11 = smov [#allocation4]  }
  0x6e   : > { %p1973_p12 = scmp.ne.s32.totalorder %s2248_s12, %s1972_s27  ;;  %s1977_s23 = sshll.u32 %s2042_s11, 4  ;;  %s1978_s23 = int_to_ptr.vmem [resolvable:$false] %s1977_s23 }
  0x6f   : > { %s1979_s24 = scalar_lea.vmem %s1978_s23, 4096  ;;  %p1980_p13 = scmp.lt.s32.totalorder %s2248_s12, %s1978_s23 }
  0x70   : > { %p1975_p0 = pnand %p1973_p12, %p1929_p11  ;;  %p1981_p3 = scmp.lt.s32.totalorder %s1979_s24, %s1972_s27 }
  0x72   : > { %p1976_p2 = pneg %p1975_p0  ;;  %p1982_p9 = por %p1981_p3, %p1980_p13 }
  0x74   : > { %p1983_p8 = pnand %p1982_p9, %p1976_p2 }
  0x76   : > { %1986 = shalt.err (!%p1983_p8)
}
  0x77   : > { %1720 = dma.hbm_to_vmem [thread:$0]  (!%p2202_p7), %s2244_s14, 2048, %s2248_s12, %s2250_s18, %s2040_s9, %s2040_s9, %s2041_s19  }
  0x78   : > { %p2432_p11 = scmp.ne.s32.totalorder %s2428_s30, 0 }
  0x79   : > { %s306_s0 = sand.u32 (!%p2432_p11), 1, %s2025_s25   ;;  %p2433_p6 = scmp.ne.s32.totalorder (!%p2432_p11), %s2427_s29, 0 }
  0x7a   : > { %304 = sbr.rel (%p2432_p11) target bundleno = 701 (0x2bd), region = 48  ;;  %s1425_s22 = sshll.u32 (!%p2432_p11), %s306_s0, 7 }
  0x7b   : > { %s307_s21 = scalar_lea.sflag (!%p2432_p11), [#allocation3], %s306_s0  ;;  %s2282_s13 = scalar_lea.vmem (!%p2432_p11), [#allocation2], %s1425_s22 }
  0x81   : > { %2004 = dma.done.wait (%p2433_p6), %s307_s21, 2048  }
  0x82   : > { %2006 = vsyncadd (%p2433_p6), %s307_s21, 4294965248  ;;  %s315_s16 = sand.u32 1, %s2104_s28   ;;  %s2289_s9 = scalar_lea.vmem [#allocation4], %s1425_s22 }
  0x83   : > { %s316_s15 = scalar_lea.sflag [#allocation5], %s315_s16 }
  0x84   : > { %2008 = dma.done.wait (%p2433_p6), %s316_s15, 2048  }
  0x85   : > { %2010 = vsyncadd (%p2433_p6), %s316_s15, 4294965248  ;;  %p2434_p7 = scmp.eq.s32.totalorder %s2104_s28, 0 }
  0x87   : > { %2012 = dma.done.wait (%p2434_p7), [#allocation5], 4224   ;;  %p2435_p1 = pmov %p2434_p7 }
  0x89   : > { %2014 = vsyncadd (%p2435_p1), [#allocation5], 4294963072  ;;  %p2436_p4 = pmov %p2435_p1 }
  0x8a   : > { %p2437_p5 = pmov %p2435_p1 }
  0x8b   : > { %2016 = dma.done.wait (%p2436_p4), [#allocation8], 1024  }
  0x8c   : > { %2018 = vsyncadd (%p2437_p5), [#allocation8], 4294966272  ;;  %v2043_v0 = vmov 0.0   ;;  %vm2044_vm0 = vmmov 0   ;;  %v1766_v1 = vld [vmem:[#allocation6 + $0x100] sm:$0xff]   ;;  %vm558_vm1 = vcmask 130048  }
  0x8d   : > { %1641 = vmatprep.subr.bf16.mxu0 %v2043_v0  ;;  %1643 = vmatprep.mubr.msk.bf16.mxu0 %vm2044_vm0, %v2043_v0  ;;  %v1767_v2 = vld [vmem:[#allocation6 + $0x40] sm:$0xff]   ;;  %v1770_v7 = vld [vmem:[#allocation6 + $0x48] sm:$0xff]   ;;  %v1774_v11 = vld [vmem:[#allocation6 + $0x50] sm:$0xff]   ;;  %s1429_s12 = sshll.u32 %s2104_s28, 4 }
  0x8e   : > { %1642 = vmatpush3.bf16.msra.mxu0 %v1766_v1  ;;  %v1768_v3 = vld [vmem:[#allocation6] sm:$0xff]   ;;  %1497 = vmatprep.subr.bf16.mxu1 %v1767_v2  ;;  %v1772_v9 = vld [vmem:[#allocation6 + $0x8] sm:$0xff]   ;;  %v1776_v13 = vld [vmem:[#allocation6 + $0x10] sm:$0xff]   ;;  %p366_p10 = scmp.lt.s32.totalorder %s1429_s12, 31 }
  0x8f   : > { %v548_v4 = vld [vmem:[%s2417_s2] sm:$0x1]  ;;  %1498 = vmatpush3.bf16.msra.mxu1 %v1768_v3  ;;  %v1773_v10 = vld [vmem:[#allocation6 + $0xc8] sm:$0xff]   ;;  %v1777_v14 = vld [vmem:[#allocation6 + $0xd0] sm:$0xff]  }
  0x90   : > { %v549_v5 = vpack.c.bf16 %v548_v4, %v548_v4  ;;  %v1769_v6 = vld [vmem:[#allocation6 + $0xc0] sm:$0xff]   ;;  %1499 = vmatprep.subr.bf16.mxu1 %v1770_v7  ;;  %v1775_v12 = vld [vmem:[#allocation6 + $0x88] sm:$0xff]   ;;  %v1778_v15 = vld [vmem:[#allocation6 + $0x58] sm:$0xff]   ;;  %s2443_s12 = smov (!%p366_p10, %s1429_s12), 31 }
  0x91   : > { %1561 = vmatprep.subr.bf16.mxu0 %v1769_v6  ;;  %v1771_v8 = vld [vmem:[#allocation6 + $0x80] sm:$0xff]   ;;  %v1779_v16 = vld [vmem:[#allocation6 + $0x90] sm:$0xff]   ;;  %v1780_v17 = vld [vmem:[#allocation6 + $0x18] sm:$0xff]   ;;  %s1430_s18 = sshll.u32 %s2443_s12, 3 }
  0x92   : > { %1644 = vmatmul.mubr.msk.bf16.vlgmr.msra.gmra.mrb[0].mxu0 %vm558_vm1, %v549_v5  ;;  %v1781_v18 = vld [vmem:[#allocation6 + $0xd8] sm:$0xff]   ;;  %v1782_v19 = vld [vmem:[#allocation6 + $0x60] sm:$0xff]   ;;  %v1786_v23 = vld [vmem:[#allocation6 + $0x68] sm:$0xff]   ;;  %s2384_s23 = scalar_lea.vmem %s2422_s7, %s1430_s18 }
  0x93   : > { %1562 = vmatpush3.bf16.msra.mxu0 %v1771_v8  ;;  %1500 = vmatpush3.bf16.msra.mxu1 %v1772_v9  ;;  %v1783_v20 = vld [vmem:[#allocation6 + $0x98] sm:$0xff]   ;;  %v1784_v21 = vld [vmem:[#allocation6 + $0x20] sm:$0xff]   ;;  %v1788_v25 = vld [vmem:[#allocation6 + $0x28] sm:$0xff]  }
  0x94   : > { %1563 = vmatprep.subr.bf16.mxu0 %v1773_v10  ;;  %1501 = vmatprep.subr.bf16.mxu1 %v1774_v11  ;;  %v1785_v22 = vld [vmem:[#allocation6 + $0xe0] sm:$0xff]   ;;  %v1789_v26 = vld [vmem:[#allocation6 + $0xe8] sm:$0xff]   ;;  %v1790_v27 = vld [vmem:[#allocation6 + $0x70] sm:$0xff]  }
  0x95   : > { %v1787_v24 = vld [vmem:[#allocation6 + $0xa0] sm:$0xff]   ;;  %v1791_v28 = vld [vmem:[#allocation6 + $0xa8] sm:$0xff]   ;;  %v1792_v29 = vld [vmem:[#allocation6 + $0x30] sm:$0xff]  }
  0x96   : > { %v1793_v30 = vld [vmem:[#allocation6 + $0xf0] sm:$0xff]   ;;  %v1794_v31 = vld [vmem:[#allocation6 + $0x78] sm:$0xff]   ;;  %v372_v34 = vld [vmem:[%s2282_s13] sm:$0xff] }
  0x97   : > { %1564 = vmatpush3.bf16.msra.mxu0 %v1775_v12  ;;  %1502 = vmatpush3.bf16.msra.mxu1 %v1776_v13  ;;  %v1795_v32 = vld [vmem:[#allocation6 + $0xb0] sm:$0xff]   ;;  %v1796_v33 = vld [vmem:[#allocation6 + $0x38] sm:$0xff]   ;;  %v373_v35 = vld [vmem:[%s2282_s13 + $0x8] sm:$0xff] }
  0x98   : > { %1565 = vmatprep.subr.bf16.mxu0 %v1777_v14  ;;  %1503 = vmatprep.subr.bf16.mxu1 %v1778_v15  ;;  %v388_v36 = vld [vmem:[%s2289_s9] sm:$0xff]  ;;  %v389_v37 = vld [vmem:[%s2289_s9 + $0x8] sm:$0xff]  ;;  %v1797_v40 = vld [vmem:[#allocation6 + $0xf8] sm:$0xff]   ;;  %v454_v48 = vpack.c.bf16 %v373_v35, %v372_v34 }
  0x99   : > { %v420_v38 = vsub.f32 %v372_v34, %v388_v36  ;;  %v421_v39 = vsub.f32 %v373_v35, %v389_v37  ;;  %v404_v41 = vmul.f32 %v388_v36, %v372_v34  ;;  %v405_v42 = vmul.f32 %v389_v37, %v373_v35  ;;  %v1798_v43 = vld [vmem:[#allocation6 + $0xb8] sm:$0xff]   ;;  %v374_v45 = vld [vmem:[%s2282_s13 + $0x10] sm:$0xff]  ;;  %v376_v54 = vld [vmem:[%s2282_s13 + $0x20] sm:$0xff] }
  0x9a   : > { %v455_v44 = vpack.c.bf16 %v389_v37, %v388_v36  ;;  %v375_v49 = vld [vmem:[%s2282_s13 + $0x18] sm:$0xff]  ;;  %v390_v50 = vld [vmem:[%s2289_s9 + $0x10] sm:$0xff]  ;;  %v377_v55 = vld [vmem:[%s2282_s13 + $0x28] sm:$0xff] }
  0x9b   : > { %1566 = vmatpush3.bf16.msra.mxu0 %v1779_v16  ;;  %1504 = vmatpush3.bf16.msra.mxu1 %v1780_v17  ;;  %v436_v46 = vand.u32 2147483647, %v420_v38  ;;  %v437_v47 = vand.u32 2147483647, %v421_v39  ;;  %v452_v51 = vpack.c.bf16 %v405_v42, %v404_v41  ;;  %v391_v52 = vld [vmem:[%s2289_s9 + $0x18] sm:$0xff]  ;;  %v422_v53 = vsub.f32 %v374_v45, %v390_v50  ;;  %v392_v59 = vld [vmem:[%s2289_s9 + $0x20] sm:$0xff] }
  0x9c   : > { %1567 = vmatprep.subr.bf16.mxu0 %v1781_v18  ;;  %1505 = vmatprep.subr.bf16.mxu1 %v1782_v19  ;;  %v423_v57 = vsub.f32 %v375_v49, %v391_v52  ;;  %v459_v58 = vpack.c.bf16 %v391_v52, %v390_v50  ;;  %v393_v60 = vld [vmem:[%s2289_s9 + $0x28] sm:$0xff]  ;;  %v424_v62 = vsub.f32 %v376_v54, %v392_v59  ;;  %v378_v3 = vld [vmem:[%s2282_s13 + $0x30] sm:$0xff]  ;;  %v379_v4 = vld [vmem:[%s2282_s13 + $0x38] sm:$0xff] }
  0x9d   : > { %927 = vmatprep.mubr.bf16.mxu0 %v455_v44  ;;  %v453_v56 = vpack.c.bf16 %v437_v47, %v436_v46  ;;  %v438_v61 = vand.u32 2147483647, %v422_v53  ;;  %v425_v63 = vsub.f32 %v377_v55, %v393_v60  ;;  %v406_v1 = vmul.f32 %v390_v50, %v374_v45  ;;  %v394_v8 = vld [vmem:[%s2289_s9 + $0x30] sm:$0xff]  ;;  %v395_v9 = vld [vmem:[%s2289_s9 + $0x38] sm:$0xff]  ;;  %v400_v50 = vld [vmem:[%s2289_s9 + $0x60] sm:$0xff] }
  0x9e   : > { %v439_v0 = vand.u32 2147483647, %v423_v57  ;;  %v407_v2 = vmul.f32 %v391_v52, %v375_v49  ;;  %v440_v6 = vand.u32 2147483647, %v424_v62  ;;  %v458_v10 = vpack.c.bf16 %v375_v49, %v374_v45  ;;  %v382_v34 = vld [vmem:[%s2282_s13 + $0x50] sm:$0xff]  ;;  %v383_v35 = vld [vmem:[%s2282_s13 + $0x58] sm:$0xff] }
  0x9f   : > { %1568 = vmatpush3.bf16.msra.mxu0 %v1783_v20  ;;  %1506 = vmatpush3.bf16.msra.mxu1 %v1784_v21  ;;  %v441_v7 = vand.u32 2147483647, %v425_v63  ;;  %v463_v12 = vpack.c.bf16 %v393_v60, %v392_v59  ;;  %v426_v13 = vsub.f32 %v378_v3, %v394_v8  ;;  %v427_v14 = vsub.f32 %v379_v4, %v395_v9  ;;  %v380_v20 = vld [vmem:[%s2282_s13 + $0x40] sm:$0xff]  ;;  %v381_v21 = vld [vmem:[%s2282_s13 + $0x48] sm:$0xff]  ;;  %v398_v36 = vld [vmem:[%s2289_s9 + $0x50] sm:$0xff] }
  0xa0   : > { %1569 = vmatprep.subr.bf16.mxu0 %v1785_v22  ;;  %1507 = vmatprep.subr.bf16.mxu1 %v1786_v23  ;;  %v457_v5 = vpack.c.bf16 %v439_v0, %v438_v61  ;;  %v456_v11 = vpack.c.bf16 %v407_v2, %v406_v1  ;;  %v408_v16 = vmul.f32 %v392_v59, %v376_v54  ;;  %v396_v22 = vld [vmem:[%s2289_s9 + $0x40] sm:$0xff]  ;;  %v397_v23 = vld [vmem:[%s2289_s9 + $0x48] sm:$0xff]  ;;  %v399_v37 = vld [vmem:[%s2289_s9 + $0x58] sm:$0xff] }
  0xa1   : > { %830 = vmatprep.mubr.bf16.mxu1 %v453_v56  ;;  %v461_v15 = vpack.c.bf16 %v441_v7, %v440_v6  ;;  %v409_v17 = vmul.f32 %v393_v60, %v377_v55  ;;  %v442_v18 = vand.u32 2147483647, %v426_v13  ;;  %v443_v19 = vand.u32 2147483647, %v427_v14  ;;  %v385_v49 = vld [vmem:[%s2282_s13 + $0x68] sm:$0xff]  ;;  %v386_v62 = vld [vmem:[%s2282_s13 + $0x70] sm:$0xff] }
  0xa2   : > { %v466_v38 = vpack.c.bf16 %v379_v4, %v378_v3  ;;  %v430_v42 = vsub.f32 %v382_v34, %v398_v36  ;;  %v412_v44 = vmul.f32 %v396_v22, %v380_v20  ;;  %v413_v45 = vmul.f32 %v397_v23, %v381_v21  ;;  %v387_v63 = vld [vmem:[%s2282_s13 + $0x78] sm:$0xff]  ;;  %v402_v0 = vld [vmem:[%s2289_s9 + $0x70] sm:$0xff] }
  0xa3   : > { %1570 = vmatpush3.bf16.msra.mxu0 %v1787_v24  ;;  %1508 = vmatpush3.bf16.msra.mxu1 %v1788_v25  ;;  %v462_v24 = vpack.c.bf16 %v377_v55, %v376_v54  ;;  %v460_v25 = vpack.c.bf16 %v409_v17, %v408_v16  ;;  %v470_v52 = vpack.c.bf16 %v381_v21, %v380_v20  ;;  %v403_v1 = vld [vmem:[%s2289_s9 + $0x78] sm:$0xff] }
  0xa4   : > { %1571 = vmatprep.subr.bf16.mxu0 %v1789_v26  ;;  %1509 = vmatprep.subr.bf16.mxu1 %v1790_v27  ;;  %v467_v26 = vpack.c.bf16 %v395_v9, %v394_v8  ;;  %v465_v27 = vpack.c.bf16 %v443_v19, %v442_v18  ;;  %v446_v46 = vand.u32 2147483647, %v430_v42  ;;  %v468_v53 = vpack.c.bf16 %v413_v45, %v412_v44 }
  0xa5   : > { %v475_v54 = vpack.c.bf16 %v399_v37, %v398_v36  ;;  %v415_v59 = vmul.f32 %v399_v37, %v383_v35  ;;  %v474_v2 = vpack.c.bf16 %v383_v35, %v382_v34  ;;  %v434_v6 = vsub.f32 %v386_v62, %v402_v0 }
  0xa6   : > { %v435_v7 = vsub.f32 %v387_v63, %v403_v1  ;;  %v483_v14 = vpack.c.bf16 %v403_v1, %v402_v0  ;;  %v418_v16 = vmul.f32 %v402_v0, %v386_v62  ;;  %v419_v17 = vmul.f32 %v403_v1, %v387_v63 }
  0xa7   : > { %1572 = vmatpush3.bf16.msra.mxu0 %v1791_v28  ;;  %1510 = vmatpush3.bf16.msra.mxu1 %v1792_v29  ;;  %v428_v28 = vsub.f32 %v380_v20, %v396_v22  ;;  %v429_v29 = vsub.f32 %v381_v21, %v397_v23  ;;  %v482_v18 = vpack.c.bf16 %v387_v63, %v386_v62  ;;  %v1799_v20 = vld [vmem:[#allocation7] sm:$0xff]   ;;  %v1800_v21 = vld [vmem:[#allocation7 + $0x8] sm:$0xff]  }
  0xa8   : > { %1573 = vmatprep.subr.bf16.mxu0 %v1793_v30  ;;  %1511 = vmatprep.subr.bf16.mxu1 %v1794_v31  ;;  %v410_v30 = vmul.f32 %v394_v8, %v378_v3  ;;  %v411_v31 = vmul.f32 %v395_v9, %v379_v4  ;;  %v480_v19 = vpack.c.bf16 %v419_v17, %v418_v16 }
  0xaa   : > { %v464_v39 = vpack.c.bf16 %v411_v31, %v410_v30 }
  0xab   : > { %1574 = vmatpush3.bf16.msra.mxu0 %v1795_v32  ;;  %1512 = vmatpush3.bf16.msra.mxu1 %v1796_v33  ;;  %v444_v32 = vand.u32 2147483647, %v428_v28  ;;  %v445_v33 = vand.u32 2147483647, %v429_v29 }
  0xac   : > { %1575 = vmatprep.subr.bf16.mxu0 %v1797_v40  ;;  %v471_v40 = vpack.c.bf16 %v397_v23, %v396_v22  ;;  %1679 = vmatprep.subr.bf16.mxu1 %v1799_v20  ;;  %v1801_v22 = vld [vmem:[#allocation7 + $0x10] sm:$0xff]   ;;  %v1802_v23 = vld [vmem:[#allocation7 + $0x18] sm:$0xff]  }
  0xad   : > { %v469_v41 = vpack.c.bf16 %v445_v33, %v444_v32  ;;  %v602_v32 = vlaneseq }
  0xae   : > { %831 = vmatmul.mubr.bf16.vlgmr.msra.gmra.mrb[0].mxu1 %v452_v51  ;;  %v401_v51 = vld [vmem:[%s2289_s9 + $0x68] sm:$0xff] }
  0xaf   : > { %1576 = vmatpush3.bf16.msra.mxu0 %v1798_v43  ;;  %838 = vmatprep.mubr.bf16.mxu1 %v457_v5  ;;  %v431_v43 = vsub.f32 %v383_v35, %v399_v37  ;;  %v433_v57 = vsub.f32 %v385_v49, %v401_v51  ;;  %v479_v4 = vpack.c.bf16 %v401_v51, %v400_v50  ;;  %v603_v33 = vshrl.u32 %v602_v32, 7 }
  0xb0   : > { %v417_v9 = vmul.f32 %v401_v51, %v385_v49  ;;  %1647 = vmatprep.subr.bf16.mxu0 %v1799_v20  ;;  %1687 = vmatpush3.bf16.msra.mxu1 %v1799_v20 }
  0xb1   : > { %v447_v47 = vand.u32 2147483647, %v431_v43  ;;  %v449_v61 = vand.u32 2147483647, %v433_v57  ;;  %1680 = vmatprep.subr.bf16.mxu1 %v1800_v21 }
  0xb2   : > { %928 = vmatmul.mubr.bf16.vlgmr.msra.gmra.mrb[4].mxu0 %v454_v48  ;;  %v384_v48 = vld [vmem:[%s2282_s13 + $0x60] sm:$0xff] }
  0xb3   : > { %935 = vmatprep.mubr.bf16.mxu0 %v459_v58  ;;  %v473_v55 = vpack.c.bf16 %v447_v47, %v446_v46  ;;  %v432_v56 = vsub.f32 %v384_v48, %v400_v50  ;;  %v414_v58 = vmul.f32 %v398_v36, %v382_v34  ;;  %v416_v8 = vmul.f32 %v400_v50, %v384_v48 }
  0xb4   : > { %1648 = vmatpush3.bf16.msra.mxu0 %v1799_v20  ;;  %1688 = vmatpush3.bf16.msra.mxu1 %v1800_v21  ;;  %v604_v34 = vsub.s32 0, %v603_v33 }
  0xb5   : > { %v448_v60 = vand.u32 2147483647, %v432_v56  ;;  %v472_v3 = vpack.c.bf16 %v415_v59, %v414_v58  ;;  %v476_v13 = vpack.c.bf16 %v417_v9, %v416_v8  ;;  %1649 = vmatprep.subr.bf16.mxu0 %v1800_v21  ;;  %1681 = vmatprep.subr.bf16.mxu1 %v1801_v22 }
  0xb6   : > { %839 = vmatmul.mubr.bf16.gmra.mrb[4].mxu1 %v456_v11  ;;  %v451_v11 = vand.u32 2147483647, %v435_v7 }
  0xb7   : > { %846 = vmatprep.mubr.bf16.mxu1 %v461_v15  ;;  %v477_v5 = vpack.c.bf16 %v449_v61, %v448_v60 }
  0xb8   : > { %1650 = vmatpush3.bf16.msra.mxu0 %v1800_v21  ;;  %1689 = vmatpush3.bf16.msra.mxu1 %v1801_v22 }
  0xb9   : > { %1651 = vmatprep.subr.bf16.mxu0 %v1801_v22  ;;  %1682 = vmatprep.subr.bf16.mxu1 %v1802_v23 }
  0xba   : > { %936 = vmatmul.mubr.bf16.gmra.mrb[8].mxu0 %v458_v10  ;;  %v450_v10 = vand.u32 2147483647, %v434_v6 }
  0xbb   : > { %943 = vmatprep.mubr.bf16.mxu0 %v463_v12  ;;  %v478_v12 = vpack.c.bf16 %v385_v49, %v384_v48  ;;  %v2344_v49 = vld [vmem:[%s2419_s4] ss:$0 sm:$0xff] }
  0xbc   : > { %v481_v15 = vpack.c.bf16 %v451_v11, %v450_v10  ;;  %1652 = vmatpush3.bf16.msra.mxu0 %v1801_v22  ;;  %1690 = vmatpush3.bf16.msra.mxu1 %v1802_v23 }
  0xbd   : > { %1653 = vmatprep.subr.bf16.mxu0 %v1802_v23 }
  0xbe   : > { %847 = vmatmul.mubr.bf16.gmra.mrb[8].mxu1 %v460_v25  ;;  %v1804_v25 = vld [vmem:[#allocation7 + $0x28] sm:$0xff]  }
  0xbf   : > { %854 = vmatprep.mubr.bf16.mxu1 %v465_v27  ;;  %v1806_v27 = vld [vmem:[#allocation7 + $0x38] sm:$0xff]  }
  0xc0   : > { %1654 = vmatpush3.bf16.msra.mxu0 %v1802_v23 }
  0xc2   : > { %944 = vmatmul.mubr.bf16.gmra.mrb[12].mxu0 %v462_v24  ;;  %v1803_v24 = vld [vmem:[#allocation7 + $0x20] sm:$0xff]  }
  0xc3   : > { %951 = vmatprep.mubr.bf16.mxu0 %v467_v26  ;;  %1655 = vmatprep.subr.bf16.mxu0 %v1803_v24  ;;  %v1805_v26 = vld [vmem:[#allocation7 + $0x30] sm:$0xff]  }
  0xc4   : > { %1683 = vmatprep.subr.bf16.mxu1 %v1803_v24  ;;  %1656 = vmatpush3.bf16.msra.mxu0 %v1803_v24 }
  0xc5   : > { %1691 = vmatpush3.bf16.msra.mxu1 %v1803_v24  ;;  %1657 = vmatprep.subr.bf16.mxu0 %v1804_v25 }
  0xc6   : > { %855 = vmatmul.mubr.bf16.gmra.mrb[12].mxu1 %v464_v39  ;;  %1684 = vmatprep.subr.bf16.mxu1 %v1804_v25 }
  0xc7   : > { %862 = vmatprep.mubr.bf16.mxu1 %v469_v41 }
  0xc8   : > { %1658 = vmatpush3.bf16.msra.mxu0 %v1804_v25 }
  0xc9   : > { %1692 = vmatpush3.bf16.msra.mxu1 %v1804_v25  ;;  %1659 = vmatprep.subr.bf16.mxu0 %v1805_v26 }
  0xca   : > { %952 = vmatmul.mubr.bf16.gmra.mrb[16].mxu0 %v466_v38  ;;  %1685 = vmatprep.subr.bf16.mxu1 %v1805_v26 }
  0xcb   : > { %959 = vmatprep.mubr.bf16.mxu0 %v471_v40 }
  0xcc   : > { %1660 = vmatpush3.bf16.msra.mxu0 %v1805_v26 }
  0xcd   : > { %1693 = vmatpush3.bf16.msra.mxu1 %v1805_v26  ;;  %1661 = vmatprep.subr.bf16.mxu0 %v1806_v27 }
  0xce   : > { %863 = vmatmul.mubr.bf16.gmra.mrb[16].mxu1 %v468_v53  ;;  %1686 = vmatprep.subr.bf16.mxu1 %v1806_v27 }
  0xcf   : > { %870 = vmatprep.mubr.bf16.mxu1 %v473_v55 }
  0xd0   : > { %1662 = vmatpush3.bf16.msra.mxu0 %v1806_v27 }
  0xd1   : > { %1694 = vmatpush3.bf16.msra.mxu1 %v1806_v27 }
  0xd2   : > { %960 = vmatmul.mubr.bf16.gmra.mrb[20].mxu0 %v470_v52 }
  0xd3   : > { %967 = vmatprep.mubr.bf16.mxu0 %v475_v54 }
  0xd6   : > { %871 = vmatmul.mubr.bf16.gmra.mrb[20].mxu1 %v472_v3 }
  0xd7   : > { %878 = vmatprep.mubr.bf16.mxu1 %v477_v5 }
  0xda   : > { %968 = vmatmul.mubr.bf16.gmra.mrb[24].mxu0 %v474_v2 }
  0xdb   : > { %975 = vmatprep.mubr.bf16.mxu0 %v479_v4 }
  0xde   : > { %879 = vmatmul.mubr.bf16.gmra.mrb[24].mxu1 %v476_v13 }
  0xdf   : > { %886 = vmatprep.mubr.bf16.mxu1 %v481_v15 }
  0xe2   : > { %976 = vmatmul.mubr.bf16.gmra.mrb[28].mxu0 %v478_v12 }
  0xe3   : > { %983 = vmatprep.mubr.bf16.mxu0 %v483_v14 }
  0xe6   : > { %887 = vmatmul.mubr.bf16.gmra.mrb[28].mxu1 %v480_v19 }
  0xea   : > { %984 = vmatmul.mubr.bf16.gmra.mrb[32].mxu0 %v482_v18 }
 0x165   : > { %v596_v28 = vpop.f32.mrb[0].mxu0 }
 0x166   : > { %v1645_v29 = vpop.f32.mrb[1].mxu0  ;;  %v2338_v41 = vrot.slane %v596_v28, %v604_v34 }
 0x167   : > { %v599_v30 = vpop.f32.mrb[2].mxu0 }
 0x168   : > { %v1646_v31 = vpop.f32.mrb[3].mxu0 }
 0x181   : > { %v1513_v36 = vpop.f32.mrb[0].mxu1 }
 0x182   : > { %v1514_v38 = vpop.f32.mrb[1].mxu1 }
 0x183   : > { %v1515_v42 = vadd.f32 %v1514_v38, %v1513_v36  ;;  %v1516_v43 = vpop.f32.mrb[2].mxu1 }
 0x184   : > { %v1517_v45 = vpop.f32.mrb[3].mxu1 }
 0x185   : > { %v1577_v35 = vpop.f32.mrb[4].mxu0  ;;  %v833_v47 = vadd.f32 %v1515_v42, %v2338_v41  ;;  %v1518_v48 = vadd.f32 %v1517_v45, %v1516_v43 }
 0x186   : > { %v1578_v37 = vpop.f32.mrb[5].mxu0 }
 0x187   : > { %v1579_v39 = vadd.f32 %v1578_v37, %v1577_v35  ;;  %v1580_v40 = vpop.f32.mrb[6].mxu0  ;;  %v836_v50 = vadd.f32 %v1518_v48, %v2338_v41 }
 0x188   : > { %v1581_v44 = vpop.f32.mrb[7].mxu0 }
 0x189   : > { %v1582_v46 = vadd.f32 %v1581_v44, %v1580_v40  ;;  %v930_v51 = vadd.f32 %v1579_v39, %v833_v47  ;;  %v1519_v55 = vpop.f32.mrb[4].mxu1 }
 0x18a   : > { %v1520_v57 = vpop.f32.mrb[5].mxu1 }
 0x18b   : > { %v999_v53 = vadd.f32 %v2344_v49, %v930_v51  ;;  %v933_v54 = vadd.f32 %v1582_v46, %v836_v50  ;;  %v1521_v62 = vadd.f32 %v1520_v57, %v1519_v55  ;;  %v1522_v63 = vpop.f32.mrb[6].mxu1 }
 0x18c   : > { %v1523_v1 = vpop.f32.mrb[7].mxu1 }
 0x18d   : > { %v1583_v52 = vpop.f32.mrb[8].mxu0  ;;  %v1466_v60 = vmul.f32 -1.442695, %v999_v53  ;;  %v1000_v61 = vadd.f32 %v2344_v49, %v933_v54  ;;  %v841_v4 = vadd.f32 %v1521_v62, %v2338_v41  ;;  %v1524_v5 = vadd.f32 %v1523_v1, %v1522_v63 }
 0x18e   : > { %v1584_v56 = vpop.f32.mrb[9].mxu0 }
 0x18f   : > { %v1585_v58 = vadd.f32 %v1584_v56, %v1583_v52  ;;  %v1586_v59 = vpop.f32.mrb[10].mxu0  ;;  %1807 = vpow2.f32 %v1466_v60  ;;  %v1467_v3 = vmul.f32 -1.442695, %v1000_v61  ;;  %v844_v6 = vadd.f32 %v1524_v5, %v2338_v41 }
 0x190   : > { %v1587_v0 = vpop.f32.mrb[11].mxu0 }
 0x191   : > { %v1588_v2 = vadd.f32 %v1587_v0, %v1586_v59  ;;  %1809 = vpow2.f32 %v1467_v3  ;;  %v938_v7 = vadd.f32 %v1585_v58, %v841_v4  ;;  %v1525_v11 = vpop.f32.mrb[8].mxu1 }
 0x192   : > { %v1526_v13 = vpop.f32.mrb[9].mxu1 }
 0x193   : > { %v1001_v9 = vadd.f32 %v2344_v49, %v938_v7  ;;  %v941_v10 = vadd.f32 %v1588_v2, %v844_v6  ;;  %v1527_v18 = vadd.f32 %v1526_v13, %v1525_v11  ;;  %v1528_v19 = vpop.f32.mrb[10].mxu1 }
 0x194   : > { %v1529_v21 = vpop.f32.mrb[11].mxu1 }
 0x195   : > { %v1589_v8 = vpop.f32.mrb[12].mxu0  ;;  %v1468_v16 = vmul.f32 -1.442695, %v1001_v9  ;;  %v1002_v17 = vadd.f32 %v2344_v49, %v941_v10  ;;  %v849_v24 = vadd.f32 %v1527_v18, %v2338_v41  ;;  %v1530_v25 = vadd.f32 %v1529_v21, %v1528_v19 }
 0x196   : > { %v1590_v12 = vpop.f32.mrb[13].mxu0 }
 0x197   : > { %v1591_v14 = vadd.f32 %v1590_v12, %v1589_v8  ;;  %v1592_v15 = vpop.f32.mrb[14].mxu0  ;;  %1811 = vpow2.f32 %v1468_v16  ;;  %v1469_v23 = vmul.f32 -1.442695, %v1002_v17  ;;  %v852_v27 = vadd.f32 %v1530_v25, %v2338_v41 }
 0x198   : > { %v1593_v20 = vpop.f32.mrb[15].mxu0 }
 0x199   : > { %v1594_v22 = vadd.f32 %v1593_v20, %v1592_v15  ;;  %v1808_v26 = vpop.eup %1807  ;;  %1813 = vpow2.f32 %v1469_v23  ;;  %v946_v28 = vadd.f32 %v1591_v14, %v849_v24  ;;  %v1531_v34 = vpop.f32.mrb[12].mxu1 }
 0x19a   : > { %v1063_v29 = vadd.f32 1.0, %v1808_v26  ;;  %v1532_v37 = vpop.f32.mrb[13].mxu1 }
 0x19b   : > { %v1810_v31 = vpop.eup %1809  ;;  %v1003_v32 = vadd.f32 %v2344_v49, %v946_v28  ;;  %v949_v33 = vadd.f32 %v1594_v22, %v852_v27  ;;  %v1533_v43 = vadd.f32 %v1532_v37, %v1531_v34  ;;  %v1534_v44 = vpop.f32.mrb[14].mxu1 }
 0x19c   : > { %v1064_v36 = vadd.f32 1.0, %v1810_v31  ;;  %1815 = vrcp.f32 %v1063_v29  ;;  %v1535_v46 = vpop.f32.mrb[15].mxu1 }
 0x19d   : > { %v1595_v30 = vpop.f32.mrb[16].mxu0  ;;  %v1470_v40 = vmul.f32 -1.442695, %v1003_v32  ;;  %v1004_v42 = vadd.f32 %v2344_v49, %v949_v33  ;;  %v857_v50 = vadd.f32 %v1533_v43, %v2338_v41  ;;  %v1536_v51 = vadd.f32 %v1535_v46, %v1534_v44 }
 0x19e   : > { %v1596_v35 = vpop.f32.mrb[17].mxu0  ;;  %1817 = vrcp.f32 %v1064_v36 }
 0x19f   : > { %v1597_v38 = vadd.f32 %v1596_v35, %v1595_v30  ;;  %v1598_v39 = vpop.f32.mrb[18].mxu0  ;;  %1819 = vpow2.f32 %v1470_v40  ;;  %v1471_v48 = vmul.f32 -1.442695, %v1004_v42  ;;  %v860_v53 = vadd.f32 %v1536_v51, %v2338_v41 }
 0x1a0   : > { %v1599_v45 = vpop.f32.mrb[19].mxu0 }
 0x1a1   : > { %v1600_v47 = vadd.f32 %v1599_v45, %v1598_v39  ;;  %v1812_v52 = vpop.eup %1811  ;;  %1821 = vpow2.f32 %v1471_v48  ;;  %v954_v54 = vadd.f32 %v1597_v38, %v857_v50  ;;  %v1537_v60 = vpop.f32.mrb[16].mxu1 }
 0x1a2   : > { %v1065_v55 = vadd.f32 1.0, %v1812_v52  ;;  %v1538_v63 = vpop.f32.mrb[17].mxu1 }
 0x1a3   : > { %v1814_v57 = vpop.eup %1813  ;;  %v1005_v58 = vadd.f32 %v2344_v49, %v954_v54  ;;  %v957_v59 = vadd.f32 %v1600_v47, %v860_v53  ;;  %v1539_v4 = vadd.f32 %v1538_v63, %v1537_v60  ;;  %v1540_v5 = vpop.f32.mrb[18].mxu1 }
 0x1a4   : > { %v1066_v62 = vadd.f32 1.0, %v1814_v57  ;;  %1823 = vrcp.f32 %v1065_v55  ;;  %v1541_v7 = vpop.f32.mrb[19].mxu1 }
 0x1a5   : > { %v1601_v56 = vpop.f32.mrb[20].mxu0  ;;  %v1472_v2 = vmul.f32 -1.442695, %v1005_v58  ;;  %v1006_v3 = vadd.f32 %v2344_v49, %v957_v59  ;;  %v865_v11 = vadd.f32 %v1539_v4, %v2338_v41  ;;  %v1542_v12 = vadd.f32 %v1541_v7, %v1540_v5 }
 0x1a6   : > { %v1602_v61 = vpop.f32.mrb[21].mxu0  ;;  %1825 = vrcp.f32 %v1066_v62  ;;  %v1816_v9 = vpop.eup %1815 }
 0x1a7   : > { %v1603_v0 = vadd.f32 %v1602_v61, %v1601_v56  ;;  %v1604_v1 = vpop.f32.mrb[22].mxu0  ;;  %1827 = vpow2.f32 %v1472_v2  ;;  %v1473_v10 = vmul.f32 -1.442695, %v1006_v3  ;;  %v868_v15 = vadd.f32 %v1542_v12, %v2338_v41 }
 0x1a8   : > { %v1605_v6 = vpop.f32.mrb[23].mxu0  ;;  %v1818_v13 = vpop.eup %1817 }
 0x1a9   : > { %v1606_v8 = vadd.f32 %v1605_v6, %v1604_v1  ;;  %v1820_v14 = vpop.eup %1819  ;;  %1829 = vpow2.f32 %v1473_v10  ;;  %v962_v16 = vadd.f32 %v1603_v0, %v865_v11  ;;  %v1111_v17 = vpack.c.bf16 %v1818_v13, %v1816_v9  ;;  %v1543_v23 = vpop.f32.mrb[20].mxu1 }
 0x1aa   : > { %v1067_v18 = vadd.f32 1.0, %v1820_v14  ;;  %v1544_v26 = vpop.f32.mrb[21].mxu1 }
 0x1ab   : > { %v1822_v20 = vpop.eup %1821  ;;  %v1007_v21 = vadd.f32 %v2344_v49, %v962_v16  ;;  %v965_v22 = vadd.f32 %v1606_v8, %v868_v15  ;;  %1663 = vmatprep.mubr.bf16.mxu0 %v1111_v17  ;;  %v1545_v31 = vadd.f32 %v1544_v26, %v1543_v23  ;;  %v1546_v32 = vpop.f32.mrb[22].mxu1 }
 0x1ac   : > { %v1068_v25 = vadd.f32 1.0, %v1822_v20  ;;  %1831 = vrcp.f32 %v1067_v18  ;;  %v1547_v34 = vpop.f32.mrb[23].mxu1 }
 0x1ad   : > { %v1607_v19 = vpop.f32.mrb[24].mxu0  ;;  %v1474_v29 = vmul.f32 -1.442695, %v1007_v21  ;;  %v1008_v30 = vadd.f32 %v2344_v49, %v965_v22  ;;  %v873_v38 = vadd.f32 %v1545_v31, %v2338_v41  ;;  %v1548_v39 = vadd.f32 %v1547_v34, %v1546_v32 }
 0x1ae   : > { %v1608_v24 = vpop.f32.mrb[25].mxu0  ;;  %1833 = vrcp.f32 %v1068_v25  ;;  %v1824_v36 = vpop.eup %1823 }
 0x1af   : > { %v1609_v27 = vadd.f32 %v1608_v24, %v1607_v19  ;;  %v1610_v28 = vpop.f32.mrb[26].mxu0  ;;  %1835 = vpow2.f32 %v1474_v29  ;;  %v1475_v37 = vmul.f32 -1.442695, %v1008_v30  ;;  %v876_v43 = vadd.f32 %v1548_v39, %v2338_v41 }
 0x1b0   : > { %v1611_v33 = vpop.f32.mrb[27].mxu0  ;;  %v1826_v40 = vpop.eup %1825 }
 0x1b1   : > { %v1612_v35 = vadd.f32 %v1611_v33, %v1610_v28  ;;  %v1828_v42 = vpop.eup %1827  ;;  %1837 = vpow2.f32 %v1475_v37  ;;  %v970_v44 = vadd.f32 %v1609_v27, %v873_v38  ;;  %v1112_v45 = vpack.c.bf16 %v1826_v40, %v1824_v36  ;;  %v1549_v52 = vpop.f32.mrb[24].mxu1 }
 0x1b2   : > { %v1069_v46 = vadd.f32 1.0, %v1828_v42  ;;  %v1550_v55 = vpop.f32.mrb[25].mxu1 }
 0x1b3   : > { %v1830_v48 = vpop.eup %1829  ;;  %v1009_v50 = vadd.f32 %v2344_v49, %v970_v44  ;;  %v973_v51 = vadd.f32 %v1612_v35, %v876_v43  ;;  %1664 = vmatmul.mubr.bf16.vlgmr.msra.gmra.mrb[36].mxu0 %v1112_v45  ;;  %v1551_v60 = vadd.f32 %v1550_v55, %v1549_v52  ;;  %v1552_v61 = vpop.f32.mrb[26].mxu1 }
 0x1b4   : > { %v1070_v54 = vadd.f32 1.0, %v1830_v48  ;;  %1839 = vrcp.f32 %v1069_v46  ;;  %v1553_v63 = vpop.f32.mrb[27].mxu1 }
 0x1b5   : > { %v1613_v47 = vpop.f32.mrb[28].mxu0  ;;  %v1476_v58 = vmul.f32 -1.442695, %v1009_v50  ;;  %v1010_v59 = vadd.f32 %v2344_v49, %v973_v51  ;;  %v881_v3 = vadd.f32 %v1551_v60, %v2338_v41  ;;  %v1554_v4 = vadd.f32 %v1553_v63, %v1552_v61 }
 0x1b6   : > { %v1614_v53 = vpop.f32.mrb[29].mxu0  ;;  %1841 = vrcp.f32 %v1070_v54  ;;  %v1832_v1 = vpop.eup %1831 }
 0x1b7   : > { %v1615_v56 = vadd.f32 %v1614_v53, %v1613_v47  ;;  %v1616_v57 = vpop.f32.mrb[30].mxu0  ;;  %1843 = vpow2.f32 %v1476_v58  ;;  %v1477_v2 = vmul.f32 -1.442695, %v1010_v59  ;;  %v884_v7 = vadd.f32 %v1554_v4, %v2338_v41 }
 0x1b8   : > { %v1617_v62 = vpop.f32.mrb[31].mxu0  ;;  %v1834_v5 = vpop.eup %1833 }
 0x1b9   : > { %v1618_v0 = vadd.f32 %v1617_v62, %v1616_v57  ;;  %v1836_v6 = vpop.eup %1835  ;;  %1845 = vpow2.f32 %v1477_v2  ;;  %v978_v8 = vadd.f32 %v1615_v56, %v881_v3  ;;  %v1113_v9 = vpack.c.bf16 %v1834_v5, %v1832_v1  ;;  %v1555_v15 = vpop.f32.mrb[28].mxu1  ;;  %v1482_v1 = vld [vmem:[%s2421_s6] ss:$0 sm:$0xff] }
 0x1ba   : > { %v1071_v10 = vadd.f32 1.0, %v1836_v6  ;;  %v1556_v18 = vpop.f32.mrb[29].mxu1 }
 0x1bb   : > { %v1838_v12 = vpop.eup %1837  ;;  %v1011_v13 = vadd.f32 %v2344_v49, %v978_v8  ;;  %v981_v14 = vadd.f32 %v1618_v0, %v884_v7  ;;  %1667 = vmatprep.mubr.bf16.mxu1 %v1113_v9  ;;  %v1557_v23 = vadd.f32 %v1556_v18, %v1555_v15  ;;  %v1558_v24 = vpop.f32.mrb[30].mxu1 }
 0x1bc   : > { %v1072_v17 = vadd.f32 1.0, %v1838_v12  ;;  %1847 = vrcp.f32 %v1071_v10  ;;  %v1559_v26 = vpop.f32.mrb[31].mxu1 }
 0x1bd   : > { %v1619_v11 = vpop.f32.mrb[32].mxu0  ;;  %v1478_v21 = vmul.f32 -1.442695, %v1011_v13  ;;  %v1012_v22 = vadd.f32 %v2344_v49, %v981_v14  ;;  %v889_v30 = vadd.f32 %v1557_v23, %v2338_v41  ;;  %v1560_v31 = vadd.f32 %v1559_v26, %v1558_v24 }
 0x1be   : > { %v1620_v16 = vpop.f32.mrb[33].mxu0  ;;  %1849 = vrcp.f32 %v1072_v17  ;;  %v1840_v28 = vpop.eup %1839 }
 0x1bf   : > { %v1621_v19 = vadd.f32 %v1620_v16, %v1619_v11  ;;  %v1622_v20 = vpop.f32.mrb[34].mxu0  ;;  %1851 = vpow2.f32 %v1478_v21  ;;  %v1479_v29 = vmul.f32 -1.442695, %v1012_v22  ;;  %v892_v34 = vadd.f32 %v1560_v31, %v2338_v41 }
 0x1c0   : > { %v1623_v25 = vpop.f32.mrb[35].mxu0  ;;  %v1842_v32 = vpop.eup %1841 }
 0x1c1   : > { %v1624_v27 = vadd.f32 %v1623_v25, %v1622_v20  ;;  %v1844_v33 = vpop.eup %1843  ;;  %1853 = vpow2.f32 %v1479_v29  ;;  %v986_v35 = vadd.f32 %v1621_v19, %v889_v30  ;;  %v1114_v36 = vpack.c.bf16 %v1842_v32, %v1840_v28 }
 0x1c2   : > { %v1073_v37 = vadd.f32 1.0, %v1844_v33 }
 0x1c3   : > { %v1846_v38 = vpop.eup %1845  ;;  %v1013_v39 = vadd.f32 %v2344_v49, %v986_v35  ;;  %v989_v40 = vadd.f32 %v1624_v27, %v892_v34  ;;  %1668 = vmatmul.mubr.bf16.vlgmr.msra.gmra.mrb[32].mxu1 %v1114_v36 }
 0x1c4   : > { %v1074_v42 = vadd.f32 1.0, %v1846_v38  ;;  %1855 = vrcp.f32 %v1073_v37 }
 0x1c5   : > { %v1480_v43 = vmul.f32 -1.442695, %v1013_v39  ;;  %v1014_v44 = vadd.f32 %v2344_v49, %v989_v40 }
 0x1c6   : > { %1857 = vrcp.f32 %v1074_v42  ;;  %v1848_v45 = vpop.eup %1847 }
 0x1c7   : > { %1859 = vpow2.f32 %v1480_v43  ;;  %v1481_v46 = vmul.f32 -1.442695, %v1014_v44 }
 0x1c8   : > { %v1850_v47 = vpop.eup %1849 }
 0x1c9   : > { %v1852_v48 = vpop.eup %1851  ;;  %1861 = vpow2.f32 %v1481_v46  ;;  %v1115_v41 = vpack.c.bf16 %v1850_v47, %v1848_v45 }
 0x1ca   : > { %v1075_v50 = vadd.f32 1.0, %v1852_v48 }
 0x1cb   : > { %v1854_v51 = vpop.eup %1853  ;;  %1671 = vmatprep.mubr.bf16.mxu1 %v1115_v41 }
 0x1cc   : > { %v1076_v52 = vadd.f32 1.0, %v1854_v51  ;;  %1863 = vrcp.f32 %v1075_v50 }
 0x1ce   : > { %1865 = vrcp.f32 %v1076_v52  ;;  %v1856_v53 = vpop.eup %1855 }
 0x1d0   : > { %v1858_v54 = vpop.eup %1857 }
 0x1d1   : > { %v1860_v55 = vpop.eup %1859  ;;  %v1116_v56 = vpack.c.bf16 %v1858_v54, %v1856_v53 }
 0x1d2   : > { %v1077_v49 = vadd.f32 1.0, %v1860_v55 }
 0x1d3   : > { %v1862_v57 = vpop.eup %1861  ;;  %1672 = vmatmul.mubr.bf16.gmra.mrb[36].mxu1 %v1116_v56 }
 0x1d4   : > { %v1078_v58 = vadd.f32 1.0, %v1862_v57  ;;  %1867 = vrcp.f32 %v1077_v49 }
 0x1d6   : > { %1869 = vrcp.f32 %v1078_v58  ;;  %v1864_v59 = vpop.eup %1863 }
 0x1d8   : > { %v1866_v60 = vpop.eup %1865 }
 0x1d9   : > { %v1117_v61 = vpack.c.bf16 %v1866_v60, %v1864_v59 }
 0x1db   : > { %1675 = vmatprep.mubr.bf16.mxu1 %v1117_v61 }
 0x1de   : > { %v1868_v62 = vpop.eup %1867 }
 0x1e0   : > { %v1870_v63 = vpop.eup %1869 }
 0x1e1   : > { %v1118_v0 = vpack.c.bf16 %v1870_v63, %v1868_v62 }
 0x1e3   : > { %1676 = vmatmul.mubr.bf16.gmra.mrb[40].mxu1 %v1118_v0 }
 0x286   : > { %v1665_v2 = vpop.f32.mrb[36].mxu0 }
 0x287   : > { %v1233_v3 = vadd.f32 %v1665_v2, %v1482_v1  ;;  %v1224_v4 = vpop.f32.mrb[37].mxu0 }
 0x288   : > { %v1225_v5 = vadd.f32 %v1482_v1, %v1224_v4  ;;  %v1666_v6 = vpop.f32.mrb[38].mxu0 }
 0x289   : > { %1289 = vst [vmem:[%s2384_s23 + $0x10] sm:$0xff] %v1233_v3  ;;  %v1236_v7 = vadd.f32 %v1666_v6, %v1482_v1  ;;  %v1227_v8 = vpop.f32.mrb[39].mxu0 }
 0x28a   : > { %1287 = vst [vmem:[%s2384_s23] sm:$0xff] %v1225_v5  ;;  %v1228_v9 = vadd.f32 %v1482_v1, %v1227_v8 }
 0x28b   : > { %1290 = vst [vmem:[%s2384_s23 + $0x18] sm:$0xff] %v1236_v7 }
 0x28c   : > { %1288 = vst [vmem:[%s2384_s23 + $0x8] sm:$0xff] %v1228_v9 }
 0x296   : > { %v1669_v10 = vpop.f32.mrb[32].mxu1 }
 0x297   : > { %v1249_v11 = vadd.f32 %v1669_v10, %v1482_v1  ;;  %v1240_v12 = vpop.f32.mrb[33].mxu1 }
 0x298   : > { %v1241_v13 = vadd.f32 %v1482_v1, %v1240_v12  ;;  %v1670_v14 = vpop.f32.mrb[34].mxu1 }
 0x299   : > { %1293 = vst [vmem:[%s2384_s23 + $0x30] sm:$0xff] %v1249_v11  ;;  %v1252_v15 = vadd.f32 %v1670_v14, %v1482_v1  ;;  %v1243_v16 = vpop.f32.mrb[35].mxu1 }
 0x29a   : > { %1291 = vst [vmem:[%s2384_s23 + $0x20] sm:$0xff] %v1241_v13  ;;  %v1244_v17 = vadd.f32 %v1482_v1, %v1243_v16 }
 0x29b   : > { %1294 = vst [vmem:[%s2384_s23 + $0x38] sm:$0xff] %v1252_v15 }
 0x29c   : > { %1292 = vst [vmem:[%s2384_s23 + $0x28] sm:$0xff] %v1244_v17 }
 0x2a6   : > { %v1673_v18 = vpop.f32.mrb[36].mxu1 }
 0x2a7   : > { %v1265_v19 = vadd.f32 %v1673_v18, %v1482_v1  ;;  %v1256_v20 = vpop.f32.mrb[37].mxu1 }
 0x2a8   : > { %v1257_v21 = vadd.f32 %v1482_v1, %v1256_v20  ;;  %v1674_v22 = vpop.f32.mrb[38].mxu1 }
 0x2a9   : > { %1297 = vst [vmem:[%s2384_s23 + $0x50] sm:$0xff] %v1265_v19  ;;  %v1268_v23 = vadd.f32 %v1674_v22, %v1482_v1  ;;  %v1259_v24 = vpop.f32.mrb[39].mxu1 }
 0x2aa   : > { %1295 = vst [vmem:[%s2384_s23 + $0x40] sm:$0xff] %v1257_v21  ;;  %v1260_v25 = vadd.f32 %v1482_v1, %v1259_v24 }
 0x2ab   : > { %1298 = vst [vmem:[%s2384_s23 + $0x58] sm:$0xff] %v1268_v23 }
 0x2ac   : > { %1296 = vst [vmem:[%s2384_s23 + $0x48] sm:$0xff] %v1260_v25 }
 0x2b6   : > { %v1677_v26 = vpop.f32.mrb[40].mxu1 }
 0x2b7   : > { %v1281_v27 = vadd.f32 %v1677_v26, %v1482_v1  ;;  %v1272_v28 = vpop.f32.mrb[41].mxu1 }
 0x2b8   : > { %v1273_v29 = vadd.f32 %v1482_v1, %v1272_v28  ;;  %v1678_v30 = vpop.f32.mrb[42].mxu1 }
 0x2b9   : > { %1301 = vst [vmem:[%s2384_s23 + $0x70] sm:$0xff] %v1281_v27  ;;  %v1284_v31 = vadd.f32 %v1678_v30, %v1482_v1  ;;  %v1275_v32 = vpop.f32.mrb[43].mxu1 }
 0x2ba   : > { %1299 = vst [vmem:[%s2384_s23 + $0x60] sm:$0xff] %v1273_v29  ;;  %v1276_v33 = vadd.f32 %v1482_v1, %v1275_v32 }
 0x2bb   : > { %1302 = vst [vmem:[%s2384_s23 + $0x78] sm:$0xff] %v1284_v31 }
 0x2bc   : > { %1300 = vst [vmem:[%s2384_s23 + $0x68] sm:$0xff] %v1276_v33 }
 0x2bd PF: > { %p21_p12 = scmp.ge.s32.totalorder %s2178_s20, 4   ;;  %s2438_s24 = smov %s2025_s25 }
 0x2be   : > { %s2439_s25 = smov %s2029_s26  ;;  %s2440_s26 = smov %s2189_s8 }
 0x2bf   : > { %s2441_s27 = smov %s2178_s20  ;;  %23 = sbr.rel (!%p21_p12) target bundleno = 8 (0x8), region = 109 }
 0x2c6   :  { %1325 = vsyncpa [#allocation3], 1 }
 0x2c7   :  { %1327 = vsyncpa [#allocation3 + $0x1], 1 }
 0x2c8   :  { %1328 = vsyncpa [#allocation5], 1 }
 0x2c9   :  { %1330 = vsyncpa [#allocation5 + $0x1], 1 }
 0x2ca   :  { %1331 = vsyncpa [#allocation8], 1 }

</bundles_post_ra>
